<compile_context>
chip_gen: v7x
topology: tpu7x:2x2x1
jax: 0.10.0
libtpu: 0.0.40
codegen_flags: <defaults>
</compile_context>

<pallas_src>
import functools

import jax
import jax.numpy as jnp
from jax.experimental import pallas as pl
from jax.experimental.pallas import tpu as pltpu


def _graph_attn_kernel(x_ref, adj_ref, gm_ref, w_ref,
                       ws_cat_ref, r_ref, sbs_ref, wqkv_ref, wo_ref, vec_ref,
                       out_ref, *, d_model, d_in, num_weights):
    f32 = jnp.float32
    bf16 = jnp.bfloat16
    nw_dm = num_weights * d_model

    # ---- read operands once ----
    x_f = x_ref[...]                              # (N, D_in) f32
    x_bf = x_f.astype(bf16)
    adj = adj_ref[...]                            # (N, N) f32, entries 0/1
    gm = gm_ref[...]                              # (N, N) f32
    w_f = w_ref[...]                              # (N, nw) f32
    w_bf = w_f.astype(bf16)

    vec = vec_ref[...]                            # (4, W) f32 packed row vectors
    gamma = vec[0:1, :d_model]
    beta = vec[1:2, :d_model]
    bqkv = vec[2:3, :3 * d_model]                 # 1/sqrt(dm) already folded into bq part
    bo = vec[3:4, :d_in]

    # ---- dng scores: direct + neighborhood similarity + graph structure,
    #      fused into a single (N,N)@(N,D_in) matmul: (adj + sim + gm) @ x ----
    adj_bf = adj.astype(bf16)                     # 0/1 exactly representable
    inter = jnp.dot(adj_bf, adj_bf, preferred_element_type=f32)
    row_sums = jnp.sum(adj, axis=1, keepdims=True)        # (N, 1)
    col_sums = jnp.sum(adj, axis=0, keepdims=True)        # (1, N)
    union = row_sums + col_sums - inter
    sim = inter * pl.reciprocal(union + 1e-6, approx=True)  # EUP slot
    mix_bf = (adj + sim + gm).astype(bf16)
    dng = jnp.dot(mix_bf, x_bf, preferred_element_type=f32)  # (N, D_in) f32

    # ---- apply_weights, fused:  sum_i (x @ W_i + b_i) * w[:, i:i+1]
    #      == ((x @ Ws_cat) * (w @ R)) @ S  +  w @ bs      (S and bs stacked) ----
    proj = jnp.dot(x_bf, ws_cat_ref[...], preferred_element_type=f32)   # (N, nw*dm)
    w_rep = jnp.dot(w_bf, r_ref[...], preferred_element_type=f32)       # (N, nw*dm)
    sbs = sbs_ref[...]                                                   # (nw*dm+nw, dm) bf16
    weighted = jnp.dot((proj * w_rep).astype(bf16), sbs[:nw_dm, :],
                       preferred_element_type=f32)                       # (N, dm)
    weighted = weighted + jnp.dot(w_bf, sbs[nw_dm:, :],
                                  preferred_element_type=f32)

    # ---- LayerNorm over d_model (eps = 1e-5, affine) ----
    mean = jnp.mean(weighted, axis=-1, keepdims=True)
    cent = weighted - mean
    var = jnp.mean(cent * cent, axis=-1, keepdims=True)
    ln = cent * jax.lax.rsqrt(var + 1e-5) * gamma + beta
    ln_bf = ln.astype(bf16)

    # ---- modified attention; Q/K/V fused into one matmul ----
    qkv = jnp.dot(ln_bf, wqkv_ref[...], preferred_element_type=f32) + bqkv  # (N, 3dm)
    q = qkv[:, 0:d_model]
    k = qkv[:, d_model:2 * d_model]
    v = qkv[:, 2 * d_model:3 * d_model]

    # Q @ K^T without materializing the transpose (contract dim 1 of both).
    scores = jax.lax.dot_general(
        q.astype(bf16), k.astype(bf16),
        dimension_numbers=(((1,), (1,)), ((), ())),
        preferred_element_type=f32)                                     # (N, N)
    scores = scores + dng                 # requires D_in == N (asserted in wrapper)

    m = jnp.max(scores, axis=-1, keepdims=True)
    e = jnp.exp(scores - m)
    attn = e * pl.reciprocal(jnp.sum(e, axis=-1, keepdims=True), approx=True)

    attn_out = jnp.dot(attn.astype(bf16), v.astype(bf16),
                       preferred_element_type=f32)                      # (N, dm)
    out = jnp.dot(attn_out.astype(bf16), wo_ref[...],
                  preferred_element_type=f32) + bo                      # (N, D_in)

    # Dropout: identity (inference mode).
    # TODO(synk): stochastic dropout (training mode) not implemented; eval semantics used.
    out_ref[...] = jnp.maximum(out + dng, 0.0)   # F.relu(x + dng_scores)


@functools.partial(jax.jit, static_argnames=("d_model",))
def graph_transformer_aug_attention(x, adj, gm, weights, params, *, d_model):
    """x: (B, N, D_in), adj/gm: (B, N, N), weights: (B, N, num_weights)."""
    b, n, d_in = x.shape
    assert d_in == n, ("attention_scores (N,N) + dng_scores (N,D_in) only "
                       "type-checks when input_dim == num_nodes")
    num_weights = weights.shape[-1]

    f32 = jnp.float32
    bf16 = jnp.bfloat16

    # ---- one-time parameter transforms (fusion, scale folding, bf16) ----
    ws = params["Ws"].astype(f32)                                        # (nw, d_in, dm)
    ws_cat = jnp.transpose(ws, (1, 0, 2)).reshape(
        d_in, num_weights * d_model).astype(bf16)                        # (d_in, nw*dm)
    # Replicate / select matrices for the fused weighted sum (0/1 -> exact in bf16).
    r_mat = jnp.kron(jnp.eye(num_weights, dtype=f32),
                     jnp.ones((1, d_model), f32)).astype(bf16)           # (nw, nw*dm)
    s_mat = jnp.kron(jnp.ones((num_weights, 1), f32),
                     jnp.eye(d_model, dtype=f32))                        # (nw*dm, dm)
    s_bs = jnp.concatenate([s_mat, params["bs"].astype(f32)],
                           axis=0).astype(bf16)                          # (nw*dm+nw, dm)

    inv_sqrt_dm = 1.0 / (float(d_model) ** 0.5)
    wqkv = jnp.concatenate([params["Wq"].astype(f32) * inv_sqrt_dm,      # fold 1/sqrt(dm)
                            params["Wk"].astype(f32),
                            params["Wv"].astype(f32)], axis=1).astype(bf16)  # (dm, 3dm)
    bqkv = jnp.concatenate([params["bq"].astype(f32) * inv_sqrt_dm,
                            params["bk"].astype(f32),
                            params["bv"].astype(f32)], axis=1)           # (1, 3dm)
    wo = params["Wo"].astype(bf16)                                       # (dm, d_in)

    # Pack the tiny row vectors (gamma, beta, bqkv, bo) into one small slab.
    vw = max(3 * d_model, d_model, d_in)

    def _row(v):
        v = v.reshape(1, -1).astype(f32)
        return jnp.pad(v, ((0, 0), (0, vw - v.shape[1])))

    vec = jnp.concatenate([_row(params["gamma"]), _row(params["beta"]),
                           _row(bqkv), _row(params["bo"])], axis=0)      # (4, vw)

    args = (x.astype(f32), adj.astype(f32), gm.astype(f32), weights.astype(f32),
            ws_cat, r_mat, s_bs, wqkv, wo, vec)

    def batched(a):   # per-graph block, batch dim squeezed out (full-array last two dims)
        return pl.BlockSpec((None,) + a.shape[1:], lambda i: (i, 0, 0))

    def shared(a):    # parameters: whole array, same block every grid step
        return pl.BlockSpec(a.shape, lambda i: (0, 0))

    in_specs = [batched(a) for a in args[:4]] + [shared(a) for a in args[4:]]

    kernel = functools.partial(_graph_attn_kernel, d_model=d_model,
                               d_in=d_in, num_weights=num_weights)
    out = pl.pallas_call(
        kernel,
        out_shape=jax.ShapeDtypeStruct((b, n, d_in), f32),
        grid=(b,),
        in_specs=in_specs,
        out_specs=pl.BlockSpec((None, n, d_in), lambda i: (i, 0, 0)),
        compiler_params=pltpu.CompilerParams(
            # Parallel over graphs -> megacore sharding on v7x, amortized
            # per-step overhead on v5e/v6e.  For much larger N, keep the
            # explicit VMEM limit and switch to a row-tiled inner pipeline
            # (pltpu.emit_pipeline) so the all-resident (N,N) slabs do not
            # exceed v7x's 64 MiB VMEM.
            dimension_semantics=("parallel",),
            vmem_limit_bytes=32 * 1024 * 1024,
        ),
    )(*args)

    return out


def init_params(key, *, input_dim, d_model, num_weights):
    """Deterministic synthetic parameters (shapes match the PyTorch module)."""
    keys = jax.random.split(key, 10)

    def uinit(k, shape, fan_in):
        bound = 1.0 / (float(fan_in) ** 0.5)
        return jax.random.uniform(k, shape, jnp.float32, -bound, bound)

    return {
        # weight_linears: num_weights x Linear(input_dim, d_model)
        "Ws": uinit(keys[0], (num_weights, input_dim, d_model), input_dim),
        "bs": uinit(keys[1], (num_weights, d_model), input_dim),
        # LayerNorm(d_model) default affine init
        "gamma": jnp.ones((1, d_model), jnp.float32),
        "beta": jnp.zeros((1, d_model), jnp.float32),
        # query/key/value_linear: Linear(d_model, d_model)
        "Wq": uinit(keys[2], (d_model, d_model), d_model),
        "bq": uinit(keys[3], (1, d_model), d_model),
        "Wk": uinit(keys[4], (d_model, d_model), d_model),
        "bk": uinit(keys[5], (1, d_model), d_model),
        "Wv": uinit(keys[6], (d_model, d_model), d_model),
        "bv": uinit(keys[7], (1, d_model), d_model),
        # output_linear: Linear(d_model, input_dim)
        "Wo": uinit(keys[8], (d_model, input_dim), d_model),
        "bo": uinit(keys[9], (1, input_dim), d_model),
    }


if __name__ == "__main__":
    # Shapes implied by the forward: input_dim must equal num_nodes.
    B = 2             # batch of small graphs (parallel grid axis)
    N = 16            # number of graph nodes
    INPUT_DIM = 16    # == N (required by attention_scores + dng_scores add)
    D_MODEL = 32
    NUM_WEIGHTS = 10

    key = jax.random.PRNGKey(0)
    kx, ka, kg, kw, kp = jax.random.split(key, 5)

    x = jax.random.normal(kx, (B, N, INPUT_DIM), jnp.float32)
    adjacency = (jax.random.uniform(ka, (B, N, N)) < 0.4).astype(jnp.float32)
    graph_metrics = jax.random.normal(kg, (B, N, N), jnp.float32) * 0.1
    weights = jax.random.uniform(kw, (B, N, NUM_WEIGHTS), jnp.float32)

    params = init_params(kp, input_dim=INPUT_DIM, d_model=D_MODEL,
                         num_weights=NUM_WEIGHTS)

    out = graph_transformer_aug_attention(x, adjacency, graph_metrics, weights,
                                          params, d_model=D_MODEL)
    out = jax.block_until_ready(out)
    assert out.shape == (B, N, INPUT_DIM)
    assert bool(jnp.all(jnp.isfinite(out)))
    print("KERNEL_OK")
</pallas_src>

<mosaic_0001>
module attributes {stable_mosaic.version = 11 : i64} {
  func.func @_graph_attn_kernel(%arg0: i32, %arg1: memref<1x16x16xf32, #tpu.memory_space<vmem>>, %arg2: memref<1x16x16xf32, #tpu.memory_space<vmem>>, %arg3: memref<1x16x16xf32, #tpu.memory_space<vmem>>, %arg4: memref<1x16x10xf32, #tpu.memory_space<vmem>>, %arg5: memref<16x320xbf16, #tpu.memory_space<vmem>>, %arg6: memref<10x320xbf16, #tpu.memory_space<vmem>>, %arg7: memref<330x32xbf16, #tpu.memory_space<vmem>>, %arg8: memref<32x96xbf16, #tpu.memory_space<vmem>>, %arg9: memref<32x16xbf16, #tpu.memory_space<vmem>>, %arg10: memref<4x96xf32, #tpu.memory_space<vmem>>, %arg11: memref<1x16x16xf32, #tpu.memory_space<vmem>>) attributes {dimension_semantics = [#tpu.dimension_semantics<parallel>], iteration_bounds = array<i64: 2>, scalar_prefetch = 0 : i64, scratch_operands = 0 : i64, tpu.core_type = #tpu.core_type<tc>, window_params = [{transform_indices = @transform_0, window_bounds = array<i64: 1, 16, 16>}, {transform_indices = @transform_1, window_bounds = array<i64: 1, 16, 16>}, {transform_indices = @transform_2, window_bounds = array<i64: 1, 16, 16>}, {transform_indices = @transform_3, window_bounds = array<i64: 1, 16, 10>}, {pipeline_mode = #tpu.pipeline_mode<synchronous>, transform_indices = @transform_4, window_bounds = array<i64: 16, 320>}, {pipeline_mode = #tpu.pipeline_mode<synchronous>, transform_indices = @transform_5, window_bounds = array<i64: 10, 320>}, {pipeline_mode = #tpu.pipeline_mode<synchronous>, transform_indices = @transform_6, window_bounds = array<i64: 330, 32>}, {pipeline_mode = #tpu.pipeline_mode<synchronous>, transform_indices = @transform_7, window_bounds = array<i64: 32, 96>}, {pipeline_mode = #tpu.pipeline_mode<synchronous>, transform_indices = @transform_8, window_bounds = array<i64: 32, 16>}, {pipeline_mode = #tpu.pipeline_mode<synchronous>, transform_indices = @transform_9, window_bounds = array<i64: 4, 96>}, {transform_indices = @transform_10, window_bounds = array<i64: 1, 16, 16>}]} {
    %c0 = arith.constant 0 : index
    %c0_0 = arith.constant 0 : index
    %c0_1 = arith.constant 0 : index
    %0 = vector.load %arg1[%c0, %c0_0, %c0_1] : memref<1x16x16xf32, #tpu.memory_space<vmem>>, vector<1x16x16xf32>
    %1 = vector.shape_cast %0 : vector<1x16x16xf32> to vector<16x16xf32>
    %2 = arith.truncf %1 : vector<16x16xf32> to vector<16x16xbf16>
    %c0_2 = arith.constant 0 : index
    %c0_3 = arith.constant 0 : index
    %c0_4 = arith.constant 0 : index
    %3 = vector.load %arg2[%c0_2, %c0_3, %c0_4] : memref<1x16x16xf32, #tpu.memory_space<vmem>>, vector<1x16x16xf32>
    %4 = vector.shape_cast %3 : vector<1x16x16xf32> to vector<16x16xf32>
    %c0_5 = arith.constant 0 : index
    %c0_6 = arith.constant 0 : index
    %c0_7 = arith.constant 0 : index
    %5 = vector.load %arg3[%c0_5, %c0_6, %c0_7] : memref<1x16x16xf32, #tpu.memory_space<vmem>>, vector<1x16x16xf32>
    %6 = vector.shape_cast %5 : vector<1x16x16xf32> to vector<16x16xf32>
    %c0_8 = arith.constant 0 : index
    %c0_9 = arith.constant 0 : index
    %c0_10 = arith.constant 0 : index
    %7 = vector.load %arg4[%c0_8, %c0_9, %c0_10] : memref<1x16x10xf32, #tpu.memory_space<vmem>>, vector<1x16x10xf32>
    %8 = vector.shape_cast %7 : vector<1x16x10xf32> to vector<16x10xf32>
    %9 = arith.truncf %8 : vector<16x10xf32> to vector<16x10xbf16>
    %c0_11 = arith.constant 0 : index
    %c0_12 = arith.constant 0 : index
    %10 = vector.load %arg10[%c0_11, %c0_12] : memref<4x96xf32, #tpu.memory_space<vmem>>, vector<4x96xf32>
    %11 = vector.extract_strided_slice %10 {offsets = [0, 0], sizes = [1, 32], strides = [1, 1]} : vector<4x96xf32> to vector<1x32xf32>
    %12 = vector.extract_strided_slice %10 {offsets = [1, 0], sizes = [1, 32], strides = [1, 1]} : vector<4x96xf32> to vector<1x32xf32>
    %13 = vector.extract_strided_slice %10 {offsets = [2, 0], sizes = [1, 96], strides = [1, 1]} : vector<4x96xf32> to vector<1x96xf32>
    %14 = vector.extract_strided_slice %10 {offsets = [3, 0], sizes = [1, 16], strides = [1, 1]} : vector<4x96xf32> to vector<1x16xf32>
    %15 = arith.truncf %4 : vector<16x16xf32> to vector<16x16xbf16>
    %cst = arith.constant dense<0.000000e+00> : vector<16x16xf32>
    %16 = tpu.matmul %15, %15, %cst {dimension_numbers = #tpu.dot_dimension_numbers<[1], [0], [0], [1], [0, 0, 1, 1], [], []>} : vector<16x16xbf16>, vector<16x16xbf16>, vector<16x16xf32> -> vector<16x16xf32>
    %cst_13 = arith.constant dense<0.000000e+00> : vector<16xf32>
    %17 = vector.multi_reduction <add>, %4, %cst_13 [1] : vector<16x16xf32> to vector<16xf32>
    %18 = vector.shape_cast %17 : vector<16xf32> to vector<16x1xf32>
    %cst_14 = arith.constant dense<0.000000e+00> : vector<16xf32>
    %19 = vector.multi_reduction <add>, %4, %cst_14 [0] : vector<16x16xf32> to vector<16xf32>
    %20 = vector.shape_cast %19 : vector<16xf32> to vector<1x16xf32>
    %21 = vector.broadcast %18 : vector<16x1xf32> to vector<16x16xf32>
    %22 = vector.broadcast %20 : vector<1x16xf32> to vector<16x16xf32>
    %23 = arith.addf %21, %22 : vector<16x16xf32>
    %24 = arith.subf %23, %16 : vector<16x16xf32>
    %cst_15 = arith.constant 9.99999997E-7 : f32
    %25 = vector.broadcast %cst_15 : f32 to vector<16x16xf32>
    %26 = arith.addf %24, %25 : vector<16x16xf32>
    %27 = tpu.reciprocal %26 {approx = true} : vector<16x16xf32> -> vector<16x16xf32>
    %28 = arith.mulf %16, %27 : vector<16x16xf32>
    %29 = arith.addf %4, %28 : vector<16x16xf32>
    %30 = arith.addf %29, %6 : vector<16x16xf32>
    %31 = arith.truncf %30 : vector<16x16xf32> to vector<16x16xbf16>
    %cst_16 = arith.constant dense<0.000000e+00> : vector<16x16xf32>
    %32 = tpu.matmul %31, %2, %cst_16 {dimension_numbers = #tpu.dot_dimension_numbers<[1], [0], [0], [1], [0, 0, 1, 1], [], []>} : vector<16x16xbf16>, vector<16x16xbf16>, vector<16x16xf32> -> vector<16x16xf32>
    %c0_17 = arith.constant 0 : index
    %c0_18 = arith.constant 0 : index
    %33 = vector.load %arg5[%c0_17, %c0_18] : memref<16x320xbf16, #tpu.memory_space<vmem>>, vector<16x320xbf16>
    %cst_19 = arith.constant dense<0.000000e+00> : vector<16x320xf32>
    %34 = tpu.matmul %2, %33, %cst_19 {dimension_numbers = #tpu.dot_dimension_numbers<[1], [0], [0], [1], [0, 0, 1, 1], [], []>} : vector<16x16xbf16>, vector<16x320xbf16>, vector<16x320xf32> -> vector<16x320xf32>
    %c0_20 = arith.constant 0 : index
    %c0_21 = arith.constant 0 : index
    %35 = vector.load %arg6[%c0_20, %c0_21] : memref<10x320xbf16, #tpu.memory_space<vmem>>, vector<10x320xbf16>
    %cst_22 = arith.constant dense<0.000000e+00> : vector<16x320xf32>
    %36 = tpu.matmul %9, %35, %cst_22 {dimension_numbers = #tpu.dot_dimension_numbers<[1], [0], [0], [1], [0, 0, 1, 1], [], []>} : vector<16x10xbf16>, vector<10x320xbf16>, vector<16x320xf32> -> vector<16x320xf32>
    %c0_23 = arith.constant 0 : index
    %c0_24 = arith.constant 0 : index
    %37 = vector.load %arg7[%c0_23, %c0_24] : memref<330x32xbf16, #tpu.memory_space<vmem>>, vector<330x32xbf16>
    %38 = arith.mulf %34, %36 : vector<16x320xf32>
    %39 = arith.truncf %38 : vector<16x320xf32> to vector<16x320xbf16>
    %40 = vector.extract_strided_slice %37 {offsets = [0, 0], sizes = [320, 32], strides = [1, 1]} : vector<330x32xbf16> to vector<320x32xbf16>
    %cst_25 = arith.constant dense<0.000000e+00> : vector<16x32xf32>
    %41 = tpu.matmul %39, %40, %cst_25 {dimension_numbers = #tpu.dot_dimension_numbers<[1], [0], [0], [1], [0, 0, 1, 1], [], []>} : vector<16x320xbf16>, vector<320x32xbf16>, vector<16x32xf32> -> vector<16x32xf32>
    %42 = vector.extract_strided_slice %37 {offsets = [320, 0], sizes = [10, 32], strides = [1, 1]} : vector<330x32xbf16> to vector<10x32xbf16>
    %cst_26 = arith.constant dense<0.000000e+00> : vector<16x32xf32>
    %43 = tpu.matmul %9, %42, %cst_26 {dimension_numbers = #tpu.dot_dimension_numbers<[1], [0], [0], [1], [0, 0, 1, 1], [], []>} : vector<16x10xbf16>, vector<10x32xbf16>, vector<16x32xf32> -> vector<16x32xf32>
    %44 = arith.addf %41, %43 : vector<16x32xf32>
    %cst_27 = arith.constant dense<0.000000e+00> : vector<16xf32>
    %45 = vector.multi_reduction <add>, %44, %cst_27 [1] : vector<16x32xf32> to vector<16xf32>
    %46 = vector.shape_cast %45 : vector<16xf32> to vector<16x1xf32>
    %cst_28 = arith.constant 3.200000e+01 : f32
    %47 = vector.broadcast %cst_28 : f32 to vector<16x1xf32>
    %48 = arith.divf %46, %47 : vector<16x1xf32>
    %49 = vector.broadcast %48 : vector<16x1xf32> to vector<16x32xf32>
    %50 = arith.subf %44, %49 : vector<16x32xf32>
    %51 = arith.mulf %50, %50 : vector<16x32xf32>
    %cst_29 = arith.constant dense<0.000000e+00> : vector<16xf32>
    %52 = vector.multi_reduction <add>, %51, %cst_29 [1] : vector<16x32xf32> to vector<16xf32>
    %53 = vector.shape_cast %52 : vector<16xf32> to vector<16x1xf32>
    %cst_30 = arith.constant 3.200000e+01 : f32
    %54 = vector.broadcast %cst_30 : f32 to vector<16x1xf32>
    %55 = arith.divf %53, %54 : vector<16x1xf32>
    %cst_31 = arith.constant 9.99999974E-6 : f32
    %56 = vector.broadcast %cst_31 : f32 to vector<16x1xf32>
    %57 = arith.addf %55, %56 : vector<16x1xf32>
    %58 = math.rsqrt %57 : vector<16x1xf32>
    %59 = vector.broadcast %58 : vector<16x1xf32> to vector<16x32xf32>
    %60 = arith.mulf %50, %59 : vector<16x32xf32>
    %61 = vector.broadcast %11 : vector<1x32xf32> to vector<16x32xf32>
    %62 = arith.mulf %60, %61 : vector<16x32xf32>
    %63 = vector.broadcast %12 : vector<1x32xf32> to vector<16x32xf32>
    %64 = arith.addf %62, %63 : vector<16x32xf32>
    %65 = arith.truncf %64 : vector<16x32xf32> to vector<16x32xbf16>
    %c0_32 = arith.constant 0 : index
    %c0_33 = arith.constant 0 : index
    %66 = vector.load %arg8[%c0_32, %c0_33] : memref<32x96xbf16, #tpu.memory_space<vmem>>, vector<32x96xbf16>
    %cst_34 = arith.constant dense<0.000000e+00> : vector<16x96xf32>
    %67 = tpu.matmul %65, %66, %cst_34 {dimension_numbers = #tpu.dot_dimension_numbers<[1], [0], [0], [1], [0, 0, 1, 1], [], []>} : vector<16x32xbf16>, vector<32x96xbf16>, vector<16x96xf32> -> vector<16x96xf32>
    %68 = vector.broadcast %13 : vector<1x96xf32> to vector<16x96xf32>
    %69 = arith.addf %67, %68 : vector<16x96xf32>
    %70 = vector.extract_strided_slice %69 {offsets = [0, 0], sizes = [16, 32], strides = [1, 1]} : vector<16x96xf32> to vector<16x32xf32>
    %71 = vector.extract_strided_slice %69 {offsets = [0, 32], sizes = [16, 32], strides = [1, 1]} : vector<16x96xf32> to vector<16x32xf32>
    %72 = vector.extract_strided_slice %69 {offsets = [0, 64], sizes = [16, 32], strides = [1, 1]} : vector<16x96xf32> to vector<16x32xf32>
    %73 = arith.truncf %70 : vector<16x32xf32> to vector<16x32xbf16>
    %74 = arith.truncf %71 : vector<16x32xf32> to vector<16x32xbf16>
    %cst_35 = arith.constant dense<0.000000e+00> : vector<16x16xf32>
    %75 = tpu.matmul %73, %74, %cst_35 {dimension_numbers = #tpu.dot_dimension_numbers<[1], [1], [0], [0], [0, 0, 1, 0], [], []>} : vector<16x32xbf16>, vector<16x32xbf16>, vector<16x16xf32> -> vector<16x16xf32>
    %76 = arith.addf %75, %32 : vector<16x16xf32>
    %cst_36 = arith.constant dense<0xFF800000> : vector<16xf32>
    %77 = vector.multi_reduction <maximumf>, %76, %cst_36 [1] : vector<16x16xf32> to vector<16xf32>
    %78 = vector.shape_cast %77 : vector<16xf32> to vector<16x1xf32>
    %79 = vector.broadcast %78 : vector<16x1xf32> to vector<16x16xf32>
    %80 = arith.subf %76, %79 : vector<16x16xf32>
    %81 = math.exp %80 : vector<16x16xf32>
    %cst_37 = arith.constant dense<0.000000e+00> : vector<16xf32>
    %82 = vector.multi_reduction <add>, %81, %cst_37 [1] : vector<16x16xf32> to vector<16xf32>
    %83 = vector.shape_cast %82 : vector<16xf32> to vector<16x1xf32>
    %84 = tpu.reciprocal %83 {approx = true} : vector<16x1xf32> -> vector<16x1xf32>
    %85 = vector.broadcast %84 : vector<16x1xf32> to vector<16x16xf32>
    %86 = arith.mulf %81, %85 : vector<16x16xf32>
    %87 = arith.truncf %86 : vector<16x16xf32> to vector<16x16xbf16>
    %88 = arith.truncf %72 : vector<16x32xf32> to vector<16x32xbf16>
    %cst_38 = arith.constant dense<0.000000e+00> : vector<16x32xf32>
    %89 = tpu.matmul %87, %88, %cst_38 {dimension_numbers = #tpu.dot_dimension_numbers<[1], [0], [0], [1], [0, 0, 1, 1], [], []>} : vector<16x16xbf16>, vector<16x32xbf16>, vector<16x32xf32> -> vector<16x32xf32>
    %90 = arith.truncf %89 : vector<16x32xf32> to vector<16x32xbf16>
    %c0_39 = arith.constant 0 : index
    %c0_40 = arith.constant 0 : index
    %91 = vector.load %arg9[%c0_39, %c0_40] : memref<32x16xbf16, #tpu.memory_space<vmem>>, vector<32x16xbf16>
    %cst_41 = arith.constant dense<0.000000e+00> : vector<16x16xf32>
    %92 = tpu.matmul %90, %91, %cst_41 {dimension_numbers = #tpu.dot_dimension_numbers<[1], [0], [0], [1], [0, 0, 1, 1], [], []>} : vector<16x32xbf16>, vector<32x16xbf16>, vector<16x16xf32> -> vector<16x16xf32>
    %93 = vector.broadcast %14 : vector<1x16xf32> to vector<16x16xf32>
    %94 = arith.addf %92, %93 : vector<16x16xf32>
    %95 = arith.addf %94, %32 : vector<16x16xf32>
    %cst_42 = arith.constant 0.000000e+00 : f32
    %96 = vector.broadcast %cst_42 : f32 to vector<16x16xf32>
    %97 = arith.maximumf %95, %96 : vector<16x16xf32>
    %c0_43 = arith.constant 0 : index
    %c0_44 = arith.constant 0 : index
    %c0_45 = arith.constant 0 : index
    %98 = vector.load %arg11[%c0_43, %c0_44, %c0_45] : memref<1x16x16xf32, #tpu.memory_space<vmem>>, vector<1x16x16xf32>
    %99 = vector.shape_cast %98 : vector<1x16x16xf32> to vector<16x16xf32>
    %100 = vector.shape_cast %97 : vector<16x16xf32> to vector<1x16x16xf32>
    tpu.vector_store %arg11[%c0_43, %c0_44, %c0_45], %100 {strides = array<i32>} : memref<1x16x16xf32, #tpu.memory_space<vmem>>, vector<1x16x16xf32>,
    return
  }
  func.func @transform_0(%arg0: i32) -> (i32, i32, i32) {
    %c0_i32 = arith.constant 0 : i32
    %c0_i32_0 = arith.constant 0 : i32
    %c0_i32_1 = arith.constant 0 : i32
    return %arg0, %c0_i32, %c0_i32_0 : i32, i32, i32
  }
  func.func @transform_1(%arg0: i32) -> (i32, i32, i32) {
    %c0_i32 = arith.constant 0 : i32
    %c0_i32_0 = arith.constant 0 : i32
    %c0_i32_1 = arith.constant 0 : i32
    return %arg0, %c0_i32, %c0_i32_0 : i32, i32, i32
  }
  func.func @transform_2(%arg0: i32) -> (i32, i32, i32) {
    %c0_i32 = arith.constant 0 : i32
    %c0_i32_0 = arith.constant 0 : i32
    %c0_i32_1 = arith.constant 0 : i32
    return %arg0, %c0_i32, %c0_i32_0 : i32, i32, i32
  }
  func.func @transform_3(%arg0: i32) -> (i32, i32, i32) {
    %c0_i32 = arith.constant 0 : i32
    %c0_i32_0 = arith.constant 0 : i32
    %c0_i32_1 = arith.constant 0 : i32
    return %arg0, %c0_i32, %c0_i32_0 : i32, i32, i32
  }
  func.func @transform_4(%arg0: i32) -> (i32, i32) {
    %c0_i32 = arith.constant 0 : i32
    %c0_i32_0 = arith.constant 0 : i32
    %c0_i32_1 = arith.constant 0 : i32
    return %c0_i32, %c0_i32_0 : i32, i32
  }
  func.func @transform_5(%arg0: i32) -> (i32, i32) {
    %c0_i32 = arith.constant 0 : i32
    %c0_i32_0 = arith.constant 0 : i32
    %c0_i32_1 = arith.constant 0 : i32
    return %c0_i32, %c0_i32_0 : i32, i32
  }
  func.func @transform_6(%arg0: i32) -> (i32, i32) {
    %c0_i32 = arith.constant 0 : i32
    %c0_i32_0 = arith.constant 0 : i32
    %c0_i32_1 = arith.constant 0 : i32
    return %c0_i32, %c0_i32_0 : i32, i32
  }
  func.func @transform_7(%arg0: i32) -> (i32, i32) {
    %c0_i32 = arith.constant 0 : i32
    %c0_i32_0 = arith.constant 0 : i32
    %c0_i32_1 = arith.constant 0 : i32
    return %c0_i32, %c0_i32_0 : i32, i32
  }
  func.func @transform_8(%arg0: i32) -> (i32, i32) {
    %c0_i32 = arith.constant 0 : i32
    %c0_i32_0 = arith.constant 0 : i32
    %c0_i32_1 = arith.constant 0 : i32
    return %c0_i32, %c0_i32_0 : i32, i32
  }
  func.func @transform_9(%arg0: i32) -> (i32, i32) {
    %c0_i32 = arith.constant 0 : i32
    %c0_i32_0 = arith.constant 0 : i32
    %c0_i32_1 = arith.constant 0 : i32
    return %c0_i32, %c0_i32_0 : i32, i32
  }
  func.func @transform_10(%arg0: i32) -> (i32, i32, i32) {
    %c0_i32 = arith.constant 0 : i32
    %c0_i32_0 = arith.constant 0 : i32
    %c0_i32_1 = arith.constant 0 : i32
    return %arg0, %c0_i32, %c0_i32_0 : i32, i32, i32
  }
}

</mosaic_0001>

<bundles_post_ra>
// kernel: graph_transformer_aug_attention.1
= control target key start
LH: loop header
LB: loop body
LE: loop exit
PB: predicated region body
PF: predicated region fallthrough
CT: control target
= control target key end

     0   :  { %15 = vsyncpa [#allocation3], 0  ;;  %s2209_s0 = inlined_call_operand.vmem [shape: f32[2,16,16], index: 0, kind: input, shape index: {}]   ;;  %s2210_s1 = inlined_call_operand.vmem [shape: f32[2,16,16], index: 1, kind: input, shape index: {}]   ;;  %s2211_s2 = inlined_call_operand.vmem [shape: f32[2,16,16], index: 2, kind: input, shape index: {}]   ;;  %s2212_s3 = inlined_call_operand.vmem [shape: f32[2,16,10], index: 3, kind: input, shape index: {}]   ;;  %s2213_s4 = inlined_call_operand.vmem [shape: bf16[16,320], index: 4, kind: input, shape index: {}]   ;;  %s2214_s5 = inlined_call_operand.vmem [shape: bf16[10,320], index: 5, kind: input, shape index: {}]   ;;  %s2215_s6 = inlined_call_operand.vmem [shape: bf16[330,32], index: 6, kind: input, shape index: {}]   ;;  %s2216_s7 = inlined_call_operand.vmem [shape: bf16[32,96], index: 7, kind: input, shape index: {}]   ;;  %s2217_s8 = inlined_call_operand.vmem [shape: bf16[32,16], index: 8, kind: input, shape index: {}]   ;;  %s2218_s9 = inlined_call_operand.vmem [shape: f32[4,96], index: 9, kind: input, shape index: {}]   ;;  %s2219_s10 = inlined_call_operand.hbm [shape: f32[2,16,16], index: 10, kind: output, shape index: {}]  }
   0x1   :  { %17 = vsyncpa [#allocation3 + $0x1], 0  ;;  %s1897_s13 = smov 0   ;;  %s1899_s14 = smov 0  }
   0x2   :  { %s1901_s15 = smov 0   ;;  %s1903_s16 = smov 0  }
   0x3 LB: > { %s1918_s17 = sadd.s32 4294967295, %s1832_s16   ;;  %s1485_s18 = sadd.s32 4294967294, %s1832_s16   ;;  %s1832_s16 = sphi %s1903_s16, %s2225_s16   ;;  %s1828_s15 = sphi %s1901_s15, %s2224_s15   ;;  %s1824_s14 = sphi %s1899_s14, %s2223_s14   ;;  %s1820_s13 = sphi %s1897_s13, %s2222_s13  }
   0x4   : > { %s1922_s19 = sadd.s32 1, %s1832_s16   ;;  %s260_s20 = sadd.s32 1, %s1828_s15 }
   0x5   : > { %s257_s21 = ssub.s32 %s1832_s16, %s1922_s19  ;;  %p270_p0 = scmp.ne.s32.totalorder %s1828_s15, %s1824_s14 }
   0x6   : > { %p258_p1 = scmp.eq.s32.totalorder %s257_s21, 0  ;;  %p271_p2 = scmp.eq.s32.totalorder %s1918_s17, 1 }
   0x7   : > { %p276_p3 = scmp.ne.s32.totalorder %s1824_s14, %s1820_s13  ;;  %p277_p4 = scmp.eq.s32.totalorder %s1485_s18, 1 }
   0x8   : > { %s1933_s22 = scalar_select %p258_p1, %s1828_s15, %s260_s20  }
   0x9   : > { %p1935_p5 = por %p271_p2, %p270_p0  ;;  %p1939_p6 = por %p277_p4, %p276_p3 }
   0xa   : > { %p1488_p7 = scmp.ge.s32.totalorder %s1832_s16, 1  ;;  %p345_p8 = scmp.lt.s32.totalorder %s1832_s16, 3 }
   0xc   : > { %p346_p9 = pnand %p1488_p7, %p345_p8 }
   0xd   : > { %p398_p10 = scmp.lt.s32.totalorder (!%p346_p9), %s1918_s17, 1  ;;  %v1834_v0 = vmov (!%p346_p9), 0.0   ;;  %vm1835_vm0 = vmmov (!%p346_p9), 0   ;;  %vm431_vm1 = vcmask (!%p346_p9), 130048   ;;  %v1723_v7 = vld [vmem:[%s2213_s4 + $0x4] ss:$12 sps:$4 sm:$0xff] (!%p346_p9)  }
   0xe   : > { %349 = sbr.rel (%p346_p9) target bundleno = 2361 (0x939), region = 60  ;;  %1599 = vmatprep.subr.bf16.mxu0 (!%p346_p9), %v1834_v0  ;;  %1601 = vmatprep.mubr.msk.bf16.mxu0 (!%p346_p9), %vm1835_vm0, %v1834_v0  ;;  %v1721_v8 = vld [vmem:[%s2213_s4] ss:$12 sps:$4 sm:$0xff] (!%p346_p9)   ;;  %v1836_v12 = vmov (!%p346_p9), 0   ;;  %vm676_vm2 = vcmask (!%p346_p9), 1044480   ;;  %vm672_vm3 = vcmask (!%p346_p9), 80896  }
   0xf   : > { %1605 = vmatprep.subr.bf16.mxu1 (!%p346_p9), %v1834_v0  ;;  %1607 = vmatprep.mubr.msk.bf16.mxu1 (!%p346_p9), %vm1835_vm0, %v1834_v0  ;;  %v1724_v13 = vld [vmem:[%s2214_s5 + $0x4] ss:$12 sps:$4 sm:$0x1f] (!%p346_p9)   ;;  %v1726_v14 = vld [vmem:[%s2214_s5] ss:$12 sps:$4 sm:$0x1f] (!%p346_p9)  }
  0x10   : > { %v678_v15 = vsel (!%p346_p9), %vm676_vm2, %v1726_v14, 0  ;;  %v1727_v47 = vld [vmem:[%s2213_s4 + $0x8] ss:$12 sps:$4 sm:$0xff] (!%p346_p9)   ;;  %v1729_v51 = vld [vmem:[%s2215_s6 + $0x40] sm:$0xff] (!%p346_p9)   ;;  %v1735_v57 = vld [vmem:[%s2215_s6 + $0x58] sm:$0xff] (!%p346_p9)   ;;  %vm990_vm4 = vcmask (!%p346_p9), 523264  }
  0x11   : > { %v1728_v49 = vld [vmem:[%s2214_s5 + $0x8] ss:$12 sps:$4 sm:$0x1f] (!%p346_p9)   ;;  %v1730_v52 = vld [vmem:[%s2215_s6] sm:$0xff] (!%p346_p9)   ;;  %v1736_v58 = vld [vmem:[%s2215_s6 + $0x18] sm:$0xff] (!%p346_p9)   ;;  %vm1076_vm5 = vcmask (!%p346_p9), 261120  }
  0x12   : > { %v684_v50 = vsel (!%p346_p9), %vm676_vm2, %v1728_v49, 0  ;;  %v1731_v53 = vld [vmem:[%s2215_s6 + $0x48] sm:$0xff] (!%p346_p9)   ;;  %v1733_v55 = vld [vmem:[%s2215_s6 + $0x50] sm:$0xff] (!%p346_p9)   ;;  %v1737_v59 = vld [vmem:[%s2215_s6 + $0x60] sm:$0xff] (!%p346_p9)   ;;  %s1838_s21 = smov (!%p346_p9), 64   ;;  %s1551_s11 = sshll.u32 (!%p346_p9), %s1918_s17, 8 }
  0x13   : > { %v1732_v54 = vld [vmem:[%s2215_s6 + $0x8] sm:$0xff] (!%p346_p9)   ;;  %v1734_v56 = vld [vmem:[%s2215_s6 + $0x10] sm:$0xff] (!%p346_p9)   ;;  %v1738_v60 = vld [vmem:[%s2215_s6 + $0x20] sm:$0xff] (!%p346_p9)   ;;  %s1839_s28 = smov (!%p346_p9), [#allocation2]  }
  0x14   : > { %v1739_v61 = vld [vmem:[%s2215_s6 + $0x68] sm:$0xff] (!%p346_p9)   ;;  %v1741_v63 = vld [vmem:[%s2215_s6 + $0x70] sm:$0xff] (!%p346_p9)  }
  0x15   : > { %s399_s25 = scalar_select %p398_p10, %s1918_s17, 1  ;;  %v1740_v62 = vld [vmem:[%s2215_s6 + $0x28] sm:$0xff]  }
  0x17   : > { %s1953_s26 = sshll.u32 %s399_s25, 4 }
  0x18   : > { %s407_s29 = scalar_lea.vmem %s2210_s1, %s1953_s26  ;;  %s402_s12 = scalar_lea.vmem %s2209_s0, %s1953_s26 }
  0x19   : > { %v1959_v1 = vld [vmem:[%s407_s29] sm:$0xff]  ;;  %v1961_v2 = vld [vmem:[%s407_s29 + $0x8] sm:$0xff]  ;;  %s417_s29 = scalar_lea.vmem %s2212_s3, %s1953_s26  ;;  %s412_s25 = scalar_lea.vmem %s2211_s2, %s1953_s26 }
  0x1a   : > { %v430_v3 = vpack.c.bf16 %v1961_v2, %v1959_v1  ;;  %v476_v4 = vsel %vm431_vm1, %v1959_v1, 0.0  ;;  %v479_v5 = vsel %vm431_vm1, %v1961_v2, 0.0  ;;  %v419_v9 = vld [vmem:[%s402_s12] sm:$0xff]  ;;  %v420_v10 = vld [vmem:[%s402_s12 + $0x8] sm:$0xff]  ;;  %s1837_s12 = smov 96   ;;  %s1774_s26 = sshll.u32 %s1839_s28, 4  ;;  %s1775_s26 = int_to_ptr.vmem [resolvable:$false] %s1774_s26 }
  0x1b   : > { %477 = vadd.xlane.f32.xlu0 %v476_v4  ;;  %v482_v6 = vadd.f32 %v479_v5, %v476_v4  ;;  %v421_v11 = vpack.c.bf16 %v420_v10, %v419_v9  ;;  %v426_v16 = vld [vmem:[%s417_s29] sm:$0xff]  ;;  %v427_v17 = vld [vmem:[%s417_s29 + $0x8] sm:$0xff]  ;;  %s395_s29 = sand.u32 1, %s1824_s14  }
  0x1c   : > { %1600 = vmatpush3.bf16.msra.mxu0 %v430_v3  ;;  %v1994_v18 = vpack.c.bf16 %v427_v17, %v426_v16  ;;  %v424_v40 = vld [vmem:[%s412_s25] sm:$0xff]  ;;  %v425_v43 = vld [vmem:[%s412_s25 + $0x8] sm:$0xff]  ;;  %s1489_s30 = sshll.u32 %s395_s29, 4  ;;  %s2162_s25 = scalar_lea.hbm %s2219_s10, %s1551_s11 }
  0x1d   : > { %571 = vmatprep.subr.bf16.mxu0 %v1723_v7  ;;  %1606 = vmatpush3.bf16.msra.mxu1 %v421_v11  ;;  %v483_v19 = vrot.slane %v482_v6, 4  ;;  %v1743_v17 = vld [vmem:[%s2215_s6 + $0xa0] sm:$0x1f]   ;;  %s397_s18 = scalar_lea.vmem [#allocation2], %s1489_s30  ;;  %s2168_s17 = scalar_lea.sflag [#allocation3], %s395_s29 }
  0x1e   : > { %1611 = vmatprep.subr.bf16.mxu1 %v1834_v0  ;;  %s1387_s20 = sshll.u32 %s397_s18, 4  ;;  %s1776_s30 = scalar_lea.vmem %s1775_s26, 512  ;;  %s2164_s20 = int_to_ptr.vmem [resolvable:$true] %s1387_s20 }
  0x1f   : > { %1602 = vmatmul.mubr.msk.bf16.vlgmr.msra.gmra.mrb[0].mxu0 %vm431_vm1, %v430_v3  ;;  %480 = vadd.xlane.f32.xlu0 %v479_v5  ;;  %v484_v20 = vadd.f32 %v483_v19, %v482_v6  ;;  %s1770_s27 = scalar_lea.vmem %s2164_s20, 256  ;;  %p1777_p0 = scmp.lt.s32.totalorder %s2164_s20, %s1775_s26 }
  0x20   : > { %572 = vmatpush1.bf16.msra.mxu0 %v1721_v8  ;;  %603 = vmatprep.mubr.bf16.mxu0 %v1836_v12  ;;  %p1771_p11 = scmp.ne.s32.totalorder %s2164_s20, %s1770_s27  ;;  %p1778_p1 = scmp.lt.s32.totalorder %s1776_s30, %s1770_s27 }
  0x21   : > { %1508 = vmatprep.subr.msk.bf16.mxu0 %vm676_vm2, %v1724_v13  ;;  %v485_v21 = vrot.slane %v484_v20, 2  ;;  %v1744_v13 = vld [vmem:[%s2215_s6 + $0x78] sm:$0xff]  }
  0x22   : > { %p1772_p12 = pnand %p1771_p11, %p1935_p5  ;;  %p1779_p2 = por %p1778_p1, %p1777_p0 }
  0x23   : > { %v486_v22 = vadd.f32 %v485_v21, %v484_v20  ;;  %v827_v20 = vsel %vm676_vm2, %v1743_v17, 0  ;;  %v1746_v21 = vld [vmem:[%s2215_s6 + $0x80] sm:$0xff]  }
  0x24   : > { %p1773_p13 = pneg %p1772_p12 }
  0x25   : > { %v487_v24 = vrot.slane %v486_v22, 1 }
  0x26   : > { %p1780_p3 = pnand %p1779_p2, %p1773_p13 }
  0x27   : > { %1503 = vmatmul.mubr.msk.bf16.vlgmr.msra.gmra.mrb[4].mxu0 %vm431_vm1, %v421_v11  ;;  %v488_v25 = vadd.f32 %v487_v24, %v486_v22  ;;  %v1747_v22 = vld [vmem:[%s2215_s6 + $0x88] sm:$0xff]  }
  0x28   : > { %718 = vmatprep.mubr.bf16.mxu0 %v1836_v12  ;;  %687 = vmatpush1.bf16.msra.mxu0 %v678_v15  ;;  %v1745_v15 = vld [vmem:[%s2215_s6 + $0x38] sm:$0xff]  }
  0x29   : > { %1623 = vmatprep.subr.bf16.mxu0 %v1834_v0 }
  0x2f   : > { %1509 = vmatmul.mubr.msk.bf16.vlgmr.msra.gmra.mrb[8].mxu0 %vm672_vm3, %v1994_v18 }
  0x30   : > { %1625 = vmatprep.mubr.msk.bf16.mxu0 %vm1835_vm0, %v1834_v0  ;;  %1624 = vmatpush3.bf16.msra.mxu0 %v827_v20 }
  0x31   : > { %1629 = vmatprep.subr.bf16.mxu0 %v1834_v0 }
  0x37   : > { %1626 = vmatmul.mubr.msk.bf16.vlgmr.msra.gmra.mrb[12].mxu0 %vm672_vm3, %v1994_v18 }
  0x38   : > { %1630 = vmatpush3.bf16.msra.mxu0 %v1746_v21  ;;  %1637 = vmatprep.mubr.msk.bf16.mxu0 %vm1835_vm0, %v1834_v0 }
  0x39   : > { %1631 = vmatprep.subr.bf16.mxu0 %v1834_v0 }
  0x3c   : > { %1632 = vmatpush3.bf16.msra.mxu0 %v1747_v22 }
  0x3d   : > { %1633 = vmatprep.subr.bf16.mxu0 %v1834_v0 }
  0xa8   : > { %v478_v23 = vpop.xlane.xlu0 %477 }
  0xa9   : > { %v489_v27 = vadd.f32 %v488_v25, %v478_v23  ;;  %v1748_v23 = vld [vmem:[%s2215_s6 + $0x90] sm:$0xff]  }
  0xaa   : > { %1634 = vmatpush3.bf16.msra.mxu0 %v1748_v23 }
  0xab   : > { %1635 = vmatprep.subr.bf16.mxu0 %v1834_v0 }
  0xac   : > { %v481_v26 = vpop.xlane.xlu0 %480 }
  0xad   : > { %v490_v28 = vadd.f32 %v488_v25, %v481_v26 }
  0xf2   : > { %v469_v29 = vpop.f32.mrb[0].mxu0 }
  0xf3   : > { %v491_v30 = vsub.f32 %v489_v27, %v469_v29  ;;  %v1603_v31 = vpop.f32.mrb[1].mxu0 }
  0xf4   : > { %v472_v32 = vpop.f32.mrb[2].mxu0 }
  0xf5   : > { %v493_v33 = vadd.f32 1e-06, %v491_v30  ;;  %v492_v34 = vsub.f32 %v490_v28, %v472_v32  ;;  %v1604_v35 = vpop.f32.mrb[3].mxu0 }
  0xf7   : > { %1754 = vrcp.f32 %v493_v33  ;;  %v494_v36 = vadd.f32 1e-06, %v492_v34 }
  0xf9   : > { %1756 = vrcp.f32 %v494_v36 }
 0x101   : > { %v1755_v37 = vpop.eup %1754 }
 0x102   : > { %v497_v38 = vmul.f32 %v1755_v37, %v469_v29 }
 0x103   : > { %v1757_v39 = vpop.eup %1756 }
 0x104   : > { %v499_v41 = vadd.f32 %v497_v38, %v1959_v1  ;;  %v498_v42 = vmul.f32 %v1757_v39, %v472_v32  ;;  %v1742_v1 = vld [vmem:[%s2215_s6 + $0x30] sm:$0xff]  }
 0x106   : > { %v501_v44 = vadd.f32 %v499_v41, %v424_v40  ;;  %v500_v45 = vadd.f32 %v498_v42, %v1961_v2  ;;  %v605_v2 = vpop.f32.mrb[4].mxu0 }
 0x107   : > { %v607_v3 = vpop.f32.mrb[5].mxu0 }
 0x108   : > { %v502_v46 = vadd.f32 %v500_v45, %v425_v43  ;;  %v609_v4 = vpop.f32.mrb[6].mxu0 }
 0x109   : > { %v611_v5 = vpop.f32.mrb[7].mxu0 }
 0x10a   : > { %v503_v48 = vpack.c.bf16 %v502_v46, %v501_v44  ;;  %v720_v6 = vpop.f32.mrb[8].mxu0 }
 0x10b   : > { %v812_v7 = vmul.f32 %v720_v6, %v605_v2  ;;  %v722_v8 = vpop.f32.mrb[9].mxu0 }
 0x10c   : > { %1608 = vmatmul.mubr.msk.bf16.vlgmr.msra.gmra.mrb[0].mxu1 %vm431_vm1, %v503_v48  ;;  %v813_v9 = vmul.f32 %v722_v8, %v607_v3  ;;  %v724_v10 = vpop.f32.mrb[10].mxu0 }
 0x10d   : > { %1612 = vmatpush3.bf16.msra.mxu1 %v1727_v47  ;;  %1613 = vmatprep.mubr.msk.bf16.mxu1 %vm1835_vm0, %v1834_v0  ;;  %v726_v12 = vpop.f32.mrb[11].mxu0 }
 0x10e   : > { %1617 = vmatprep.subr.bf16.mxu1 %v1834_v0  ;;  %v816_v14 = vmul.f32 %v726_v12, %v611_v5  ;;  %v1104_v5 = vlaneseq }
 0x110   : > { %v819_v19 = vpack.c.bf16 %v816_v14, %v813_v9  ;;  %v2117_v9 = vshrl.u32 %v1104_v5, 7 }
 0x114   : > { %1614 = vmatmul.mubr.msk.bf16.vlgmr.msra.gmra.mrb[4].mxu1 %vm431_vm1, %v421_v11  ;;  %v815_v11 = vmul.f32 %v724_v10, %v609_v4  ;;  %v1106_v10 = vsub.s32 0, %v2117_v9 }
 0x115   : > { %1618 = vmatpush3.bf16.msra.mxu1 %v684_v50  ;;  %1619 = vmatprep.mubr.msk.bf16.mxu1 %vm1835_vm0, %v1834_v0 }
 0x116   : > { %1562 = vmatprep.subr.bf16.mxu1 %v1729_v51  ;;  %v818_v16 = vpack.c.bf16 %v815_v11, %v812_v7  ;;  %v2123_v11 = vld [vmem:[%s2218_s9] sm:$0xf] }
 0x11c   : > { %1620 = vmatmul.mubr.msk.bf16.vlgmr.msra.gmra.mrb[8].mxu1 %vm672_vm3, %v1994_v18  ;;  %v1749_v18 = vld [vmem:[%s2215_s6 + $0x98] sm:$0xff]  }
 0x11d   : > { %1563 = vmatpush3.bf16.msra.mxu1 %v1730_v52  ;;  %1026 = vmatprep.mubr.bf16.mxu1 %v819_v19 }
 0x11e   : > { %1564 = vmatprep.subr.bf16.mxu1 %v1731_v53  ;;  %1636 = vmatpush3.bf16.msra.mxu0 %v1749_v18 }
 0x11f   : > { %1641 = vmatprep.subr.bf16.mxu0 %v1834_v0 }
 0x121   : > { %1565 = vmatpush3.bf16.msra.mxu1 %v1732_v54 }
 0x122   : > { %1566 = vmatprep.subr.bf16.mxu1 %v1733_v55 }
 0x125   : > { %1567 = vmatpush3.bf16.msra.mxu1 %v1734_v56 }
 0x126   : > { %1568 = vmatprep.subr.bf16.mxu1 %v1735_v57 }
 0x129   : > { %1569 = vmatpush3.bf16.msra.mxu1 %v1736_v58 }
 0x12a   : > { %1570 = vmatprep.subr.bf16.mxu1 %v1737_v59 }
 0x12d   : > { %1571 = vmatpush3.bf16.msra.mxu1 %v1738_v60 }
 0x12e   : > { %1572 = vmatprep.subr.bf16.mxu1 %v1739_v61 }
 0x131   : > { %1573 = vmatpush3.bf16.msra.mxu1 %v1740_v62 }
 0x132   : > { %1574 = vmatprep.subr.bf16.mxu1 %v1741_v63  ;;  %v1750_v63 = vld [vmem:[%s2216_s7] sm:$0xff]  }
 0x135   : > { %1575 = vmatpush3.bf16.msra.mxu1 %v1742_v1  ;;  %v1751_v1 = vld [vmem:[%s2216_s7 + $0x8] sm:$0xff]  }
 0x136   : > { %1576 = vmatprep.subr.bf16.mxu1 %v1744_v13  ;;  %v1107_v13 = vrot.slane %v2123_v11, %v1106_v10 }
 0x139   : > { %1577 = vmatpush3.bf16.msra.mxu1 %v1745_v15  ;;  %v1112_v15 = vsub.s32 1, %v2117_v9 }
 0x13a   : > { %1655 = vmatprep.subr.bf16.mxu1 %v1834_v0 }
 0x13b   : > { %v1113_v20 = vrot.slane %v2123_v11, %v1112_v15 }
 0x13c   : > { %1027 = vmatmul.mubr.bf16.vlgmr.msra.gmra.mrb[12].mxu1 %v818_v16 }
 0x13d   : > { %1657 = vmatprep.mubr.msk.bf16.mxu1 %vm1835_vm0, %v1834_v0 }
 0x1df   : > { %v2099_v24 = vpop.f32.mrb[0].mxu1 }
 0x1e0   : > { %v1609_v25 = vpop.f32.mrb[1].mxu1 }
 0x1e1   : > { %v2101_v26 = vpop.f32.mrb[2].mxu1  ;;  %v1123_v25 = vsub.s32 2, %v2117_v9 }
 0x1e2   : > { %v1610_v27 = vpop.f32.mrb[3].mxu1 }
 0x1e3   : > { %v1124_v27 = vrot.slane %v2123_v11, %v1123_v25 }
 0x1e7   : > { %v648_v28 = vpop.f32.mrb[4].mxu1 }
 0x1e8   : > { %v1615_v29 = vpop.f32.mrb[5].mxu1 }
 0x1e9   : > { %v651_v30 = vpop.f32.mrb[6].mxu1 }
 0x1ea   : > { %v1616_v31 = vpop.f32.mrb[7].mxu1 }
 0x1ef   : > { %v763_v32 = vpop.f32.mrb[8].mxu1 }
 0x1f0   : > { %v814_v33 = vmul.f32 %v763_v32, %v648_v28  ;;  %v1621_v34 = vpop.f32.mrb[9].mxu1 }
 0x1f1   : > { %v766_v35 = vpop.f32.mrb[10].mxu1 }
 0x1f2   : > { %v817_v36 = vmul.f32 %v766_v35, %v651_v30  ;;  %v1622_v37 = vpop.f32.mrb[11].mxu1 }
 0x1f4   : > { %v820_v38 = vpack.c.bf16 %v817_v36, %v814_v33 }
 0x1f6   : > { %1638 = vmatmul.mubr.msk.bf16.vlgmr.msra.gmra.mrb[12].mxu0 %vm990_vm4, %v820_v38 }
 0x1f7   : > { %1645 = vmatprep.mubr.msk.bf16.mxu0 %vm1835_vm0, %v1834_v0  ;;  %1642 = vmatpush3.bf16.msra.mxu0 %v1750_v63 }
 0x1f8   : > { %1643 = vmatprep.subr.bf16.mxu0 %v1834_v0 }
 0x1fb   : > { %1644 = vmatpush3.bf16.msra.mxu0 %v1751_v1  ;;  %v1753_v1 = vld [vmem:[%s2217_s8 + $0x8] sm:$0xff]  }
 0x1fc   : > { %1649 = vmatprep.subr.bf16.mxu0 %v1834_v0 }
 0x20f   : > { %v1578_v39 = vpop.f32.mrb[12].mxu1 }
 0x210   : > { %v1579_v40 = vpop.f32.mrb[13].mxu1 }
 0x211   : > { %v1580_v41 = vadd.f32 %v1579_v40, %v1578_v39  ;;  %v1581_v42 = vpop.f32.mrb[14].mxu1 }
 0x212   : > { %v1582_v43 = vpop.f32.mrb[15].mxu1 }
 0x213   : > { %v1583_v44 = vadd.f32 %v1582_v43, %v1581_v42 }
 0x2c9   : > { %v1069_v45 = vpop.f32.mrb[12].mxu0 }
 0x2ca   : > { %v1669_v46 = vadd.f32 %v1580_v41, %v1069_v45  ;;  %v1639_v47 = vpop.f32.mrb[13].mxu0 }
 0x2cb   : > { %v1072_v48 = vpop.f32.mrb[14].mxu0 }
 0x2cc   : > { %v1670_v49 = vadd.f32 %v1583_v44, %v1072_v48  ;;  %v1640_v50 = vpop.f32.mrb[15].mxu0  ;;  %v1077_v51 = vsel %vm1076_vm5, %v1669_v46, 0.0 }
 0x2cd   : > { %1078 = vadd.xlane.f32.xlu1 %v1077_v51 }
 0x2ce   : > { %v1080_v52 = vsel %vm1076_vm5, %v1670_v49, 0.0 }
 0x2d1   : > { %1081 = vadd.xlane.f32.xlu1 %v1080_v52 }
 0x35a   : > { %v1079_v53 = vpop.xlane.xlu1 %1078 }
 0x35b   : > { %v1084_v54 = vmul.f32 0.03125, %v1079_v53 }
 0x35d   : > { %v1086_v55 = vsub.f32 %v1669_v46, %v1084_v54 }
 0x35e   : > { %v1082_v56 = vpop.xlane.xlu1 %1081 }
 0x35f   : > { %v1085_v57 = vmul.f32 0.03125, %v1082_v56  ;;  %v1088_v58 = vmul.f32 %v1086_v55, %v1086_v55 }
 0x361   : > { %v1087_v59 = vsub.f32 %v1670_v49, %v1085_v57  ;;  %v1090_v60 = vsel %vm1076_vm5, %v1088_v58, 0.0 }
 0x362   : > { %1091 = vadd.xlane.f32.xlu0 %v1090_v60 }
 0x363   : > { %v1089_v61 = vmul.f32 %v1087_v59, %v1087_v59 }
 0x365   : > { %v1093_v62 = vsel %vm1076_vm5, %v1089_v61, 0.0 }
 0x366   : > { %1094 = vadd.xlane.f32.xlu1 %v1093_v62 }
 0x3ef   : > { %v1092_v2 = vpop.xlane.xlu0 %1091 }
 0x3f0   : > { %v1096_v3 = vmul.f32 0.03125, %v1092_v2 }
 0x3f2   : > { %v1098_v4 = vadd.f32 1e-05, %v1096_v3 }
 0x3f3   : > { %v1095_v6 = vpop.xlane.xlu1 %1094 }
 0x3f4   : > { %1758 = vrsqrt.f32 %v1098_v4  ;;  %v1097_v7 = vmul.f32 0.03125, %v1095_v6  ;;  %v1309_v6 = vsub.s32 3, %v2117_v9 }
 0x3f6   : > { %v1099_v8 = vadd.f32 1e-05, %v1097_v7  ;;  %v1310_v7 = vrot.slane %v2123_v11, %v1309_v6 }
 0x3f8   : > { %1760 = vrsqrt.f32 %v1099_v8 }
 0x3fe   : > { %v1759_v12 = vpop.eup %1758 }
 0x3ff   : > { %v1102_v14 = vmul.f32 %v1759_v12, %v1086_v55  ;;  %v1752_v55 = vld [vmem:[%s2217_s8] sm:$0xff]  }
 0x401   : > { %v1108_v17 = vmul.f32 %v1107_v13, %v1102_v14 }
 0x402   : > { %v1761_v16 = vpop.eup %1760 }
 0x403   : > { %v1103_v19 = vmul.f32 %v1761_v16, %v1087_v59  ;;  %v1114_v22 = vadd.f32 %v1113_v20, %v1108_v17 }
 0x405   : > { %v1109_v21 = vmul.f32 %v1107_v13, %v1103_v19 }
 0x407   : > { %v1115_v23 = vadd.f32 %v1113_v20, %v1109_v21 }
 0x409   : > { %v1116_v18 = vpack.c.bf16 %v1115_v23, %v1114_v22 }
 0x40b   : > { %1646 = vmatmul.mubr.msk.bf16.vlgmr.msra.gmra.mrb[16].mxu0 %vm1076_vm5, %v1116_v18 }
 0x40c   : > { %1651 = vmatprep.mubr.msk.bf16.mxu0 %vm1835_vm0, %v1834_v0 }
 0x4de   : > { %v1174_v28 = vpop.f32.mrb[16].mxu0 }
 0x4df   : > { %v1647_v29 = vpop.f32.mrb[17].mxu0  ;;  %v1175_v31 = vadd.f32 %v1174_v28, %v1124_v27 }
 0x4e0   : > { %v1177_v30 = vpop.f32.mrb[18].mxu0 }
 0x4e1   : > { %v1178_v32 = vadd.f32 %v1177_v30, %v1124_v27  ;;  %v1648_v33 = vpop.f32.mrb[19].mxu0 }
 0x4e3   : > { %v1181_v34 = vpack.c.bf16 %v1178_v32, %v1175_v31 }
 0x4e5   : > { %1183 = vrot.lane.b32.xlu0 %v1181_v34, %s1837_s12 }
 0x557   : > { %v1184_v35 = vpop.permute.xlu0 %1183 }
 0x558   : > { %v1189_v36 = vsel %vm1076_vm5, %v1184_v35, 0 }
 0x559   : > { %1650 = vmatpush3.bf16.xpose.msra.mxu0 %v1189_v36 }
 0x55a   : > { %1661 = vmatprep.subr.bf16.mxu0 %v1834_v0 }
 0x560   : > { %1652 = vmatmul.mubr.msk.bf16.vlgmr.msra.gmra.mrb[20].mxu0 %vm1076_vm5, %v1181_v34 }
 0x561   : > { %1665 = vmatprep.mubr.msk.bf16.mxu0 %vm1835_vm0, %v1834_v0  ;;  %1662 = vmatpush3.bf16.msra.mxu0 %v1752_v55 }
 0x562   : > { %1663 = vmatprep.subr.bf16.mxu0 %v1834_v0 }
 0x565   : > { %1664 = vmatpush3.bf16.msra.mxu0 %v1753_v1 }
 0x633   : > { %v1225_v37 = vpop.f32.mrb[20].mxu0 }
 0x634   : > { %v1226_v38 = vadd.f32 %v1225_v37, %v2099_v24  ;;  %v1653_v39 = vpop.f32.mrb[21].mxu0 }
 0x635   : > { %v1228_v40 = vpop.f32.mrb[22].mxu0 }
 0x636   : > { %v1229_v41 = vadd.f32 %v1228_v40, %v2101_v26  ;;  %v1654_v42 = vpop.f32.mrb[23].mxu0  ;;  %v1232_v43 = vsel %vm431_vm1, %v1226_v38, -inf }
 0x637   : > { %1233 = vmax.xlane.f32.xlu1 %v1232_v43 }
 0x638   : > { %v1235_v44 = vsel %vm431_vm1, %v1229_v41, -inf }
 0x63b   : > { %1236 = vmax.xlane.f32.xlu1 %v1235_v44 }
 0x6c4   : > { %v1234_v45 = vpop.xlane.xlu1 %1233 }
 0x6c5   : > { %v1238_v46 = vsub.f32 %v1226_v38, %v1234_v45 }
 0x6c7   : > { %v1240_v47 = vmul.f32 1.442695, %v1238_v46 }
 0x6c8   : > { %v1237_v48 = vpop.xlane.xlu1 %1236 }
 0x6c9   : > { %1762 = vpow2.f32 %v1240_v47  ;;  %v1239_v49 = vsub.f32 %v1229_v41, %v1237_v48 }
 0x6cb   : > { %v1242_v50 = vmul.f32 1.442695, %v1239_v49 }
 0x6cd   : > { %1764 = vpow2.f32 %v1242_v50 }
 0x6d3   : > { %v1763_v51 = vpop.eup %1762 }
 0x6d4   : > { %v1244_v52 = vsel %vm431_vm1, %v1763_v51, 0.0 }
 0x6d5   : > { %1245 = vadd.xlane.f32.xlu1 %v1244_v52 }
 0x6d7   : > { %v1765_v53 = vpop.eup %1764 }
 0x6d8   : > { %v1247_v54 = vsel %vm431_vm1, %v1765_v53, 0.0 }
 0x6d9   : > { %1248 = vadd.xlane.f32.xlu1 %v1247_v54 }
 0x6ea   : > { %1255 = vrot.lane.b32.xlu1 %v1181_v34, %s1838_s21 }
 0x762   : > { %v1246_v56 = vpop.xlane.xlu1 %1245 }
 0x763   : > { %1766 = vrcp.f32 %v1246_v56 }
 0x766   : > { %v1249_v57 = vpop.xlane.xlu1 %1248 }
 0x767   : > { %1768 = vrcp.f32 %v1249_v57 }
 0x76a   : > { %v1256_v58 = vpop.permute.xlu1 %1255 }
 0x76b   : > { %1656 = vmatpush3.bf16.msra.mxu1 %v1256_v58 }
 0x76d   : > { %v1767_v59 = vpop.eup %1766 }
 0x76e   : > { %v1252_v61 = vmul.f32 %v1767_v59, %v1763_v51 }
 0x771   : > { %v1769_v60 = vpop.eup %1768 }
 0x772   : > { %v1253_v62 = vmul.f32 %v1769_v60, %v1765_v53 }
 0x774   : > { %v1254_v63 = vpack.c.bf16 %v1253_v62, %v1252_v61 }
 0x776   : > { %1658 = vmatmul.mubr.msk.bf16.vlgmr.msra.gmra.mrb[16].mxu1 %vm431_vm1, %v1254_v63 }
 0x849   : > { %v1295_v0 = vpop.f32.mrb[16].mxu1 }
 0x84a   : > { %v1659_v2 = vpop.f32.mrb[17].mxu1 }
 0x84b   : > { %v1298_v3 = vpop.f32.mrb[18].mxu1 }
 0x84c   : > { %v1302_v4 = vpack.c.bf16 %v1298_v3, %v1295_v0  ;;  %v1660_v5 = vpop.f32.mrb[19].mxu1 }
 0x84e   : > { %1666 = vmatmul.mubr.msk.bf16.vlgmr.msra.gmra.mrb[24].mxu0 %vm1076_vm5, %v1302_v4 }
 0x921   : > { %v1360_v8 = vpop.f32.mrb[24].mxu0 }
 0x922   : > { %v1361_v10 = vadd.f32 %v1360_v8, %v1310_v7  ;;  %v1667_v12 = vpop.f32.mrb[25].mxu0 }
 0x923   : > { %v1363_v13 = vpop.f32.mrb[26].mxu0 }
 0x924   : > { %v1367_v14 = vadd.f32 %v1361_v10, %v2099_v24  ;;  %v1364_v15 = vadd.f32 %v1363_v13, %v1310_v7  ;;  %v1668_v16 = vpop.f32.mrb[27].mxu0 }
 0x926   : > { %v1369_v17 = vmax.f32 %v1367_v14, 0.0  ;;  %v1368_v19 = vadd.f32 %v1364_v15, %v2101_v26 }
 0x928   : > { %1371 = vst.msk [vmem:[%s397_s18] sm:$0xff] %vm431_vm1, %v1369_v17  ;;  %v1370_v24 = vmax.f32 %v1368_v19, 0.0 }
 0x92a   : > { %1372 = vst.msk [vmem:[%s397_s18 + $0x8] sm:$0xff] %vm431_vm1, %v1370_v24 }
 0x92b   : > { %1783 = shalt.err (!%p1780_p3)
}
 0x92c   : > { %s1784_s29 = scalar_lea.hbm %s2162_s25, 256  ;;  %s1788_s12 = scalar_lea.hbm %s2219_s10, 512 }
 0x92d   : > { %p1785_p4 = scmp.ne.s32.totalorder %s2162_s25, %s1784_s29  ;;  %p1789_p9 = scmp.lt.u32.totalorder %s2162_s25, %s2219_s10 }
 0x92e   : > { %p1790_p10 = scmp.lt.u32.totalorder %s1788_s12, %s1784_s29  ;;  %p1792_p12 = scmp.lt.u32.totalorder %s1784_s29, %s2162_s25 }
 0x92f   : > { %p1786_p7 = pnand %p1785_p4, %p1935_p5 }
 0x930   : > { %p1791_p11 = por %p1790_p10, %p1789_p9 }
 0x931   : > { %p1787_p8 = pneg %p1786_p7 }
 0x932   : > { %p1793_p13 = por %p1792_p12, %p1791_p11 }
 0x934   : > { %p1794_p0 = pnand %p1793_p13, %p1787_p8 }
 0x936   : > { %1797 = shalt.err (!%p1794_p0)
}
 0x937   : > { %s1840_s27 = smov 128   ;;  %s1841_s26 = smov 8  }
 0x938   : > { %1675 = dma.vmem_to_hbm [thread:$0]  (%p1935_p5), %s2164_s20, 256, %s2162_s25, %s2168_s17, %s1840_s27, %s1840_s27, %s1841_s26  }
 0x939 PF: > { %p1681_p1 = scmp.ge.s32.totalorder %s1832_s16, 2  ;;  %s1402_s30 = sand.u32 1, %s1820_s13  }
 0x93a   : > { %s1403_s29 = scalar_lea.sflag [#allocation3], %s1402_s30 }
 0x93b   : > { %p1678_p2 = pnand %p1681_p1, %p1939_p6 }
 0x93d   : > { %1815 = dma.done.wait (!%p1678_p2), %s1403_s29, 256  }
 0x93e   : > { %1817 = vsyncadd (!%p1678_p2), %s1403_s29, 4294967040  ;;  %p20_p3 = scmp.ge.s32.totalorder %s1922_s19, 4   ;;  %s2222_s13 = smov %s1824_s14 }
 0x93f   : > { %s2223_s14 = smov %s1828_s15  ;;  %s2224_s15 = smov %s1933_s22 }
 0x940   : > { %s2225_s16 = smov %s1922_s19  ;;  %22 = sbr.rel (!%p20_p3) target bundleno = 3 (0x3), region = 104 }
 0x947   :  { %1408 = vsyncpa [#allocation3], 1 }
 0x948   :  { %1410 = vsyncpa [#allocation3 + $0x1], 1 }

</bundles_post_ra>
